<compile_context>
chip_gen: v7x
topology: tpu7x:2x2x1
jax: 0.10.0
libtpu: 0.0.40
codegen_flags: <defaults>
</compile_context>

<pallas_src>
import functools

import jax
import jax.numpy as jnp
from jax import lax
from jax.experimental import pallas as pl
from jax.experimental.pallas import tpu as pltpu


def _round_up(x, m):
    return ((x + m - 1) // m) * m


def _num_tensorcores():
    """TensorCores per chip: 2 on v7x, 1 on v5e/v6e. Defensive default: 1."""
    try:
        kind = jax.devices()[0].device_kind.lower()
    except Exception:
        return 1
    return 2 if "v7" in kind else 1


def _mlp_kernel(x_ref, w0t_ref, b0t_ref, wht_ref, bht_ref, wot_ref, bot_ref,
                out_ref, *, layers):
    """Transposed-layout MLP forward for one batch tile (batch on lanes).

    x_ref   : [1, tile_n]  f32                 (waveguide widths)
    w0t_ref : [nodes, 1]  f32,  b0t_ref: [nodes, 1] f32
    wht_ref : [layers, nodes, nodes]  bf16     (pre-transposed: wht[l] = wh[l].T)
    bht_ref : [layers, nodes, 1]  f32
    wot_ref : [modes_pad, nodes]  bf16,  bot_ref: [modes_pad, 1] f32
    out_ref : [modes_pad, tile_n]  f32
    """
    x = x_ref[...]                                              # [1, tile_n]
    # First Linear has K=1: outer-product broadcast on the VPU, no MXU round trip.
    h = jnp.maximum(w0t_ref[...] * x + b0t_ref[...], 0.0)      # [nodes, tile_n] f32

    def hidden(l, h):
        a = jnp.dot(wht_ref[l], h.astype(jnp.bfloat16),
                    preferred_element_type=jnp.float32) + bht_ref[l]
        return jnp.maximum(a, 0.0)

    if layers <= 4:
        # Small configs (demo: layers=2): static trace-time unroll.
        for l in range(layers):
            h = hidden(l, h)
    else:
        # Larger configs: fori_loop bounds vreg live ranges; unroll keeps LLO
        # scheduler visibility.
        h = lax.fori_loop(0, layers, hidden, h, unroll=True)

    out = jnp.dot(wot_ref[...], h.astype(jnp.bfloat16),
                  preferred_element_type=jnp.float32) + bot_ref[...]
    out_ref[...] = out.astype(out_ref.dtype)


def prepare_neff_params(params):
    """One-time weight prep (transpose / pad / bf16-cast).

    gen_neff's weights are frozen at inference, so doing this on every forward
    call would add ~6 XLA transpose/cast ops + HBM round trips per launch.
    """
    w0, b0, wh, bh, wo, bo = params
    nodes = w0.shape[1]
    layers = wh.shape[0]
    modes = wo.shape[1]
    modes_pad = _round_up(modes, 8)   # full 8-sublane output rows -> unmasked vst

    w0t = jnp.transpose(w0).astype(jnp.float32)                 # [nodes, 1] (VPU layer, f32)
    b0t = jnp.reshape(b0, (nodes, 1)).astype(jnp.float32)       # [nodes, 1]
    wht = jnp.transpose(wh, (0, 2, 1)).astype(jnp.bfloat16)     # [layers, nodes, nodes]
    bht = jnp.transpose(bh, (0, 2, 1)).astype(jnp.float32)      # [layers, nodes, 1]
    wot = jnp.zeros((modes_pad, nodes), jnp.bfloat16)
    wot = wot.at[:modes].set(jnp.transpose(wo).astype(jnp.bfloat16))   # [modes_pad, nodes]
    bot = jnp.zeros((modes_pad, 1), jnp.float32)
    bot = bot.at[:modes].set(jnp.reshape(bo, (modes, 1)).astype(jnp.float32))

    return {
        "w0t": w0t, "b0t": b0t, "wht": wht, "bht": bht, "wot": wot, "bot": bot,
        "nodes": nodes, "layers": layers, "modes": modes, "modes_pad": modes_pad,
    }


def gen_neff_forward(hs, prepared, *, tile_n=None):
    """hs: [N] waveguide widths -> [N, modes] neffs (gen_neff.forward)."""
    nodes = prepared["nodes"]
    layers = prepared["layers"]
    modes = prepared["modes"]
    modes_pad = prepared["modes_pad"]

    hs = jnp.reshape(hs, (-1,))
    N = hs.shape[0]
    if N == 0:
        return jnp.zeros((0, modes), jnp.float32)

    # ---- generation-aware, lane-dense batch tile ----
    ntc = _num_tensorcores()
    if tile_n is None:
        # Per-tile compute at nodes=32 is only a few hundred cycles, comparable
        # to the ~0.35 us per-grid-step overhead -> use big tiles. VMEM cost of
        # [nodes, tile_n] f32 temps is tiny even at tile_n=8192.
        tile_n = 2048 if N <= 131072 else 8192
    # v7x (2 TCs): keep >= 2 steps per core so both cores pipeline i+1/i-1.
    # v5e/v6e (1 TC): splitting small N only duplicates per-step overhead, so
    # allow a single tile that covers all of N.
    min_steps = 2 * ntc if ntc > 1 else 1
    cap = _round_up(max(pl.cdiv(N, min_steps), 1), 128)
    tile_n = max(128, min(_round_up(tile_n, 128), cap))
    n_pad = _round_up(N, tile_n)

    # Batch-as-lanes layout: hs -> [1, n_pad]; padded tail columns are computed
    # and dropped after the kernel (pad-row outputs are unused).
    x = jnp.zeros((1, n_pad), jnp.float32).at[0, :N].set(hs.astype(jnp.float32))

    kernel = functools.partial(_mlp_kernel, layers=layers)

    out_t = pl.pallas_call(
        kernel,
        out_shape=jax.ShapeDtypeStruct((modes_pad, n_pad), jnp.float32),
        grid_spec=pl.GridSpec(
            grid=(n_pad // tile_n,),
            in_specs=[
                pl.BlockSpec((1, tile_n), lambda i: (0, i)),                # x tile
                pl.BlockSpec((nodes, 1), lambda i: (0, 0)),                 # w0^T
                pl.BlockSpec((nodes, 1), lambda i: (0, 0)),                 # b0^T
                pl.BlockSpec((layers, nodes, nodes), lambda i: (0, 0, 0)),  # hidden W^T (bf16)
                pl.BlockSpec((layers, nodes, 1), lambda i: (0, 0, 0)),      # hidden b^T
                pl.BlockSpec((modes_pad, nodes), lambda i: (0, 0)),         # w_out^T (bf16, padded)
                pl.BlockSpec((modes_pad, 1), lambda i: (0, 0)),             # b_out^T (padded)
            ],
            out_specs=pl.BlockSpec((modes_pad, tile_n), lambda i: (0, i)),
        ),
        compiler_params=pltpu.CompilerParams(
            dimension_semantics=("parallel",)),
    )(x, prepared["w0t"], prepared["b0t"], prepared["wht"], prepared["bht"],
      prepared["wot"], prepared["bot"])

    # [modes_pad, n_pad] -> [N, modes]
    return jnp.transpose(out_t)[:N, :modes]


def init_params(key, *, modes, nodes, layers):
    """Deterministic PyTorch-Linear-style init: U(-1/sqrt(fan_in), 1/sqrt(fan_in))."""
    ks = jax.random.split(key, 6)

    def u(k, shape, fan_in):
        bound = 1.0 / jnp.sqrt(jnp.float32(fan_in))
        return jax.random.uniform(k, shape, jnp.float32, -bound, bound)

    w0 = u(ks[0], (1, nodes), 1)
    b0 = u(ks[1], (1, nodes), 1)
    wh = u(ks[2], (layers, nodes, nodes), nodes)
    bh = u(ks[3], (layers, 1, nodes), nodes)
    wo = u(ks[4], (nodes, modes), nodes)
    bo = u(ks[5], (1, modes), nodes)
    return (w0, b0, wh, bh, wo, bo)


def _reference_mlp(hs, params):
    """Pure-JAX f32 reference of the same MLP (for correctness check)."""
    w0, b0, wh, bh, wo, bo = params
    x = hs.reshape(-1, 1).astype(jnp.float32)
    h = jnp.maximum(x @ w0 + b0, 0.0)
    for l in range(wh.shape[0]):
        h = jnp.maximum(h @ wh[l] + bh[l], 0.0)
    return h @ wo + bo


# TODO(synk): the rest of SCMT_Model (sparse C/K assembly + coalesce, torch.inverse,
# torch.matrix_exp of the eigen-matrix, the gen_En overlap-add, and the FFT
# free-space propagation layer) is not implemented here — only the gen_neff MLP
# hot path runs in Pallas.

if __name__ == "__main__":
    # Small shapes consistent with gen_neff: modes=4, nodes=32, layers=2.
    # N=1000 (not a tile multiple) exercises the padding path; on single-TC
    # chips it runs as one 1024-wide tile, on v7x as 4 parallel 256-wide tiles.
    modes, nodes, layers = 4, 32, 2
    N = 1000

    key = jax.random.PRNGKey(0)
    k_par, k_hs = jax.random.split(key)
    params = init_params(k_par, modes=modes, nodes=nodes, layers=layers)
    # waveguide widths, e.g. in [0.1, 0.3] um
    hs = jax.random.uniform(k_hs, (N,), jnp.float32, 0.1, 0.3)

    prepared = prepare_neff_params(params)          # one-time frozen-weight prep
    neffs = gen_neff_forward(hs, prepared)
    neffs = jax.block_until_ready(neffs)

    ref = _reference_mlp(hs, params)
    assert neffs.shape == (N, modes)
    # bf16 MXU inputs with f32 accumulation -> relaxed tolerance vs the f32 reference.
    err = float(jnp.max(jnp.abs(neffs - ref)))
    assert jnp.allclose(neffs, ref, atol=2e-2, rtol=2e-2), err

    print("KERNEL_OK")
</pallas_src>

<mosaic_0001>
module attributes {stable_mosaic.version = 11 : i64} {
  func.func @_mlp_kernel(%arg0: i32, %arg1: memref<1x1024xf32, #tpu.memory_space<vmem>>, %arg2: memref<32x1xf32, #tpu.memory_space<vmem>>, %arg3: memref<32x1xf32, #tpu.memory_space<vmem>>, %arg4: memref<2x32x32xbf16, #tpu.memory_space<vmem>>, %arg5: memref<2x32x1xf32, #tpu.memory_space<vmem>>, %arg6: memref<8x32xbf16, #tpu.memory_space<vmem>>, %arg7: memref<8x1xf32, #tpu.memory_space<vmem>>, %arg8: memref<8x1024xf32, #tpu.memory_space<vmem>>) attributes {dimension_semantics = [#tpu.dimension_semantics<parallel>], iteration_bounds = array<i64: 1>, scalar_prefetch = 0 : i64, scratch_operands = 0 : i64, tpu.core_type = #tpu.core_type<tc>, window_params = [{transform_indices = @transform_0, window_bounds = array<i64: 1, 1024>}, {pipeline_mode = #tpu.pipeline_mode<synchronous>, transform_indices = @transform_1, window_bounds = array<i64: 32, 1>}, {pipeline_mode = #tpu.pipeline_mode<synchronous>, transform_indices = @transform_2, window_bounds = array<i64: 32, 1>}, {pipeline_mode = #tpu.pipeline_mode<synchronous>, transform_indices = @transform_3, window_bounds = array<i64: 2, 32, 32>}, {pipeline_mode = #tpu.pipeline_mode<synchronous>, transform_indices = @transform_4, window_bounds = array<i64: 2, 32, 1>}, {pipeline_mode = #tpu.pipeline_mode<synchronous>, transform_indices = @transform_5, window_bounds = array<i64: 8, 32>}, {pipeline_mode = #tpu.pipeline_mode<synchronous>, transform_indices = @transform_6, window_bounds = array<i64: 8, 1>}, {transform_indices = @transform_7, window_bounds = array<i64: 8, 1024>}]} {
    %c0 = arith.constant 0 : index
    %c0_0 = arith.constant 0 : index
    %0 = vector.load %arg1[%c0, %c0_0] : memref<1x1024xf32, #tpu.memory_space<vmem>>, vector<1x1024xf32>
    %c0_1 = arith.constant 0 : index
    %c0_2 = arith.constant 0 : index
    %1 = vector.load %arg2[%c0_1, %c0_2] : memref<32x1xf32, #tpu.memory_space<vmem>>, vector<32x1xf32>
    %2 = vector.broadcast %1 : vector<32x1xf32> to vector<32x1024xf32>
    %3 = vector.broadcast %0 : vector<1x1024xf32> to vector<32x1024xf32>
    %4 = arith.mulf %2, %3 : vector<32x1024xf32>
    %c0_3 = arith.constant 0 : index
    %c0_4 = arith.constant 0 : index
    %5 = vector.load %arg3[%c0_3, %c0_4] : memref<32x1xf32, #tpu.memory_space<vmem>>, vector<32x1xf32>
    %6 = vector.broadcast %5 : vector<32x1xf32> to vector<32x1024xf32>
    %7 = arith.addf %4, %6 : vector<32x1024xf32>
    %cst = arith.constant 0.000000e+00 : f32
    %8 = vector.broadcast %cst : f32 to vector<32x1024xf32>
    %9 = arith.maximumf %7, %8 : vector<32x1024xf32>
    %c0_5 = arith.constant 0 : index
    %c0_6 = arith.constant 0 : index
    %c0_7 = arith.constant 0 : index
    %10 = vector.load %arg4[%c0_5, %c0_6, %c0_7] : memref<2x32x32xbf16, #tpu.memory_space<vmem>>, vector<1x32x32xbf16>
    %11 = vector.shape_cast %10 : vector<1x32x32xbf16> to vector<32x32xbf16>
    %12 = arith.truncf %9 : vector<32x1024xf32> to vector<32x1024xbf16>
    %cst_8 = arith.constant dense<0.000000e+00> : vector<32x1024xf32>
    %13 = tpu.matmul %11, %12, %cst_8 {dimension_numbers = #tpu.dot_dimension_numbers<[1], [0], [0], [1], [0, 0, 1, 1], [], []>} : vector<32x32xbf16>, vector<32x1024xbf16>, vector<32x1024xf32> -> vector<32x1024xf32>
    %c0_9 = arith.constant 0 : index
    %c0_10 = arith.constant 0 : index
    %c0_11 = arith.constant 0 : index
    %14 = vector.load %arg5[%c0_9, %c0_10, %c0_11] : memref<2x32x1xf32, #tpu.memory_space<vmem>>, vector<1x32x1xf32>
    %15 = vector.shape_cast %14 : vector<1x32x1xf32> to vector<32x1xf32>
    %16 = vector.broadcast %15 : vector<32x1xf32> to vector<32x1024xf32>
    %17 = arith.addf %13, %16 : vector<32x1024xf32>
    %cst_12 = arith.constant 0.000000e+00 : f32
    %18 = vector.broadcast %cst_12 : f32 to vector<32x1024xf32>
    %19 = arith.maximumf %17, %18 : vector<32x1024xf32>
    %c1 = arith.constant 1 : index
    %c0_13 = arith.constant 0 : index
    %c0_14 = arith.constant 0 : index
    %20 = vector.load %arg4[%c1, %c0_13, %c0_14] : memref<2x32x32xbf16, #tpu.memory_space<vmem>>, vector<1x32x32xbf16>
    %21 = vector.shape_cast %20 : vector<1x32x32xbf16> to vector<32x32xbf16>
    %22 = arith.truncf %19 : vector<32x1024xf32> to vector<32x1024xbf16>
    %cst_15 = arith.constant dense<0.000000e+00> : vector<32x1024xf32>
    %23 = tpu.matmul %21, %22, %cst_15 {dimension_numbers = #tpu.dot_dimension_numbers<[1], [0], [0], [1], [0, 0, 1, 1], [], []>} : vector<32x32xbf16>, vector<32x1024xbf16>, vector<32x1024xf32> -> vector<32x1024xf32>
    %c1_16 = arith.constant 1 : index
    %c0_17 = arith.constant 0 : index
    %c0_18 = arith.constant 0 : index
    %24 = vector.load %arg5[%c1_16, %c0_17, %c0_18] : memref<2x32x1xf32, #tpu.memory_space<vmem>>, vector<1x32x1xf32>
    %25 = vector.shape_cast %24 : vector<1x32x1xf32> to vector<32x1xf32>
    %26 = vector.broadcast %25 : vector<32x1xf32> to vector<32x1024xf32>
    %27 = arith.addf %23, %26 : vector<32x1024xf32>
    %cst_19 = arith.constant 0.000000e+00 : f32
    %28 = vector.broadcast %cst_19 : f32 to vector<32x1024xf32>
    %29 = arith.maximumf %27, %28 : vector<32x1024xf32>
    %c0_20 = arith.constant 0 : index
    %c0_21 = arith.constant 0 : index
    %30 = vector.load %arg6[%c0_20, %c0_21] : memref<8x32xbf16, #tpu.memory_space<vmem>>, vector<8x32xbf16>
    %31 = arith.truncf %29 : vector<32x1024xf32> to vector<32x1024xbf16>
    %cst_22 = arith.constant dense<0.000000e+00> : vector<8x1024xf32>
    %32 = tpu.matmul %30, %31, %cst_22 {dimension_numbers = #tpu.dot_dimension_numbers<[1], [0], [0], [1], [0, 0, 1, 1], [], []>} : vector<8x32xbf16>, vector<32x1024xbf16>, vector<8x1024xf32> -> vector<8x1024xf32>
    %c0_23 = arith.constant 0 : index
    %c0_24 = arith.constant 0 : index
    %33 = vector.load %arg7[%c0_23, %c0_24] : memref<8x1xf32, #tpu.memory_space<vmem>>, vector<8x1xf32>
    %34 = vector.broadcast %33 : vector<8x1xf32> to vector<8x1024xf32>
    %35 = arith.addf %32, %34 : vector<8x1024xf32>
    %c0_25 = arith.constant 0 : index
    %c0_26 = arith.constant 0 : index
    %36 = vector.load %arg8[%c0_25, %c0_26] : memref<8x1024xf32, #tpu.memory_space<vmem>>, vector<8x1024xf32>
    tpu.vector_store %arg8[%c0_25, %c0_26], %35 {strides = array<i32>} : memref<8x1024xf32, #tpu.memory_space<vmem>>, vector<8x1024xf32>,
    return
  }
  func.func @transform_0(%arg0: i32) -> (i32, i32) {
    %c0_i32 = arith.constant 0 : i32
    %c0_i32_0 = arith.constant 0 : i32
    return %c0_i32, %arg0 : i32, i32
  }
  func.func @transform_1(%arg0: i32) -> (i32, i32) {
    %c0_i32 = arith.constant 0 : i32
    %c0_i32_0 = arith.constant 0 : i32
    %c0_i32_1 = arith.constant 0 : i32
    return %c0_i32, %c0_i32_0 : i32, i32
  }
  func.func @transform_2(%arg0: i32) -> (i32, i32) {
    %c0_i32 = arith.constant 0 : i32
    %c0_i32_0 = arith.constant 0 : i32
    %c0_i32_1 = arith.constant 0 : i32
    return %c0_i32, %c0_i32_0 : i32, i32
  }
  func.func @transform_3(%arg0: i32) -> (i32, i32, i32) {
    %c0_i32 = arith.constant 0 : i32
    %c0_i32_0 = arith.constant 0 : i32
    %c0_i32_1 = arith.constant 0 : i32
    %c0_i32_2 = arith.constant 0 : i32
    return %c0_i32, %c0_i32_0, %c0_i32_1 : i32, i32, i32
  }
  func.func @transform_4(%arg0: i32) -> (i32, i32, i32) {
    %c0_i32 = arith.constant 0 : i32
    %c0_i32_0 = arith.constant 0 : i32
    %c0_i32_1 = arith.constant 0 : i32
    %c0_i32_2 = arith.constant 0 : i32
    return %c0_i32, %c0_i32_0, %c0_i32_1 : i32, i32, i32
  }
  func.func @transform_5(%arg0: i32) -> (i32, i32) {
    %c0_i32 = arith.constant 0 : i32
    %c0_i32_0 = arith.constant 0 : i32
    %c0_i32_1 = arith.constant 0 : i32
    return %c0_i32, %c0_i32_0 : i32, i32
  }
  func.func @transform_6(%arg0: i32) -> (i32, i32) {
    %c0_i32 = arith.constant 0 : i32
    %c0_i32_0 = arith.constant 0 : i32
    %c0_i32_1 = arith.constant 0 : i32
    return %c0_i32, %c0_i32_0 : i32, i32
  }
  func.func @transform_7(%arg0: i32) -> (i32, i32) {
    %c0_i32 = arith.constant 0 : i32
    %c0_i32_0 = arith.constant 0 : i32
    return %c0_i32, %arg0 : i32, i32
  }
}

</mosaic_0001>

<bundles_post_ra>
// kernel: tpu_custom_call.1
= control target key start
LH: loop header
LB: loop body
LE: loop exit
PB: predicated region body
PF: predicated region fallthrough
CT: control target
= control target key end

     0   :  { %v1101_v2 = vmov 0   ;;  %s1448_s0 = inlined_call_operand.vmem [shape: f32[1,1024], index: 0, kind: input, shape index: {}]   ;;  %s1449_s1 = inlined_call_operand.vmem [shape: f32[32,1], index: 1, kind: input, shape index: {}]   ;;  %s1450_s2 = inlined_call_operand.vmem [shape: f32[32,1], index: 2, kind: input, shape index: {}]   ;;  %s1451_s3 = inlined_call_operand.vmem [shape: bf16[2,32,32], index: 3, kind: input, shape index: {}]   ;;  %s1452_s4 = inlined_call_operand.vmem [shape: f32[2,32,1], index: 4, kind: input, shape index: {}]   ;;  %s1453_s5 = inlined_call_operand.vmem [shape: bf16[8,32], index: 5, kind: input, shape index: {}]   ;;  %s1454_s6 = inlined_call_operand.vmem [shape: f32[8,1], index: 6, kind: input, shape index: {}]   ;;  %s1455_s7 = inlined_call_operand.hbm [shape: f32[8,1024], index: 7, kind: output, shape index: {}]  }
   0x1   :  { %v126_v0 = vld [vmem:[%s1450_s2] sm:$0xff]  ;;  %1072 = vset.pattern.permute.xlu1 %v1101_v2  ;;  %1071 = vset.pattern.permute.xlu0 %v1101_v2  ;;  %v127_v3 = vld [vmem:[%s1450_s2 + $0x8] sm:$0xff]  ;;  %v32_v5 = vld [vmem:[%s1449_s1 + $0x18] sm:$0xff] }
   0x2   :  { %v29_v1 = vld [vmem:[%s1449_s1] sm:$0xff]  ;;  %132 = vperm.xlu1 %1072, %v126_v0   ;;  %v30_v4 = vld [vmem:[%s1449_s1 + $0x8] sm:$0xff]  ;;  %307 = vmatprep.mubr.bf16.mxu0 %v1101_v2  ;;  %v31_v6 = vld [vmem:[%s1449_s1 + $0x10] sm:$0xff] }
   0x3   :  { %35 = vperm.xlu0 %1071, %v29_v1   ;;  %360 = vmatprep.mubr.bf16.mxu1 %v1101_v2 }
   0x6   :  { %137 = vperm.xlu1 %1072, %v127_v3  }
   0x7   :  { %40 = vperm.xlu0 %1071, %v30_v4  }
   0x8   :  { %12 = vsyncpa [#allocation3], 0  ;;  %v129_v7 = vld [vmem:[%s1450_s2 + $0x18] sm:$0xff]  ;;  %v128_v8 = vld [vmem:[%s1450_s2 + $0x10] sm:$0xff]  ;;  %v54_v18 = vlaneseq  ;;  %vm268_vm0 = vcmask 261120  }
   0x9   :  { %v235_v9 = vld [vmem:[%s1452_s4 + $0x8] sm:$0xff]  ;;  %v234_v10 = vld [vmem:[%s1452_s4] sm:$0xff]  ;;  %v237_v11 = vld [vmem:[%s1452_s4 + $0x18] sm:$0xff] }
   0xa   :  { %50 = vperm.xlu1 %1072, %v32_v5   ;;  %v236_v12 = vld [vmem:[%s1452_s4 + $0x10] sm:$0xff]  ;;  %v1052_v13 = vld [vmem:[%s1452_s4 + $0x28] sm:$0xff]  ;;  %v1051_v14 = vld [vmem:[%s1452_s4 + $0x20] sm:$0xff]  ;;  %v55_v19 = vshrl.u32 %v54_v18, 7 }
   0xb   :  { %45 = vperm.xlu0 %1071, %v31_v6   ;;  %v1054_v15 = vld [vmem:[%s1452_s4 + $0x38] sm:$0xff]  ;;  %v1053_v16 = vld [vmem:[%s1452_s4 + $0x30] sm:$0xff]  ;;  %v842_v17 = vld [vmem:[%s1454_s6] sm:$0xff] }
   0xc   :  { %v60_v20 = vsub.s32 1, %v55_v19  ;;  %v68_v21 = vsub.s32 3, %v55_v19  ;;  %v56_v22 = vsub.s32 0, %v55_v19  ;;  %v64_v23 = vsub.s32 2, %v55_v19  ;;  %v28_v24 = vld [vmem:[%s1448_s0] sm:$0xff] }
   0xd   :  { %v76_v25 = vsub.s32 5, %v55_v19  ;;  %v84_v26 = vsub.s32 7, %v55_v19  ;;  %v72_v27 = vsub.s32 4, %v55_v19  ;;  %v80_v28 = vsub.s32 6, %v55_v19 }
   0xe   :  { %147 = vperm.xlu1 %1072, %v129_v7   ;;  %v61_v29 = vrot.slane %v28_v24, %v60_v20  ;;  %v69_v30 = vrot.slane %v28_v24, %v68_v21  ;;  %v57_v31 = vrot.slane %v28_v24, %v56_v22  ;;  %v65_v32 = vrot.slane %v28_v24, %v64_v23 }
   0xf   :  { %142 = vperm.xlu0 %1071, %v128_v8   ;;  %v1201_v33 = vrot.slane %v28_v24, %v76_v25  ;;  %v1203_v34 = vrot.slane %v28_v24, %v84_v26  ;;  %v1205_v35 = vrot.slane %v28_v24, %v72_v27  ;;  %v1207_v36 = vrot.slane %v28_v24, %v80_v28 }
  0x12   :  { %245 = vperm.xlu1 %1072, %v235_v9  }
  0x13   :  { %240 = vperm.xlu0 %1071, %v234_v10  }
  0x16   :  { %255 = vperm.xlu1 %1072, %v237_v11  }
  0x17   :  { %250 = vperm.xlu0 %1071, %v236_v12  }
  0x1a   :  { %552 = vperm.xlu1 %1072, %v1052_v13  }
  0x1b   :  { %547 = vperm.xlu0 %1071, %v1051_v14  }
  0x1e   :  { %562 = vperm.xlu1 %1072, %v1054_v15  }
  0x1f   :  { %557 = vperm.xlu0 %1071, %v1053_v16  }
  0x23   :  { %845 = vperm.xlu0 %1071, %v842_v17  }
  0x81   :  { %v133_v37 = vpop.permute.xlu1 %132 }
  0x82   :  { %v36_v38 = vpop.permute.xlu0 %35 }
  0x83   :  { %v95_v39 = vmul.f32 %v61_v29, %v36_v38  ;;  %v97_v40 = vmul.f32 %v69_v30, %v36_v38  ;;  %v94_v41 = vmul.f32 %v57_v31, %v36_v38  ;;  %v96_v42 = vmul.f32 %v65_v32, %v36_v38 }
  0x84   :  { %v99_v43 = vmul.f32 %v1201_v33, %v36_v38  ;;  %v101_v44 = vmul.f32 %v1203_v34, %v36_v38  ;;  %v98_v45 = vmul.f32 %v1205_v35, %v36_v38  ;;  %v100_v46 = vmul.f32 %v1207_v36, %v36_v38 }
  0x85   :  { %v151_v47 = vadd.f32 %v133_v37, %v95_v39  ;;  %v153_v48 = vadd.f32 %v133_v37, %v97_v40  ;;  %v150_v49 = vadd.f32 %v133_v37, %v94_v41  ;;  %v152_v50 = vadd.f32 %v133_v37, %v96_v42  ;;  %v1213_v51 = vpop.permute.xlu1 %137 }
  0x86   :  { %v1215_v52 = vpop.permute.xlu0 %40  ;;  %v1217_v53 = vadd.f32 %v133_v37, %v99_v43  ;;  %v1219_v54 = vadd.f32 %v133_v37, %v101_v44  ;;  %v1221_v55 = vadd.f32 %v133_v37, %v98_v45  ;;  %v1225_v59 = vadd.f32 %v133_v37, %v100_v46 }
  0x87   :  { %v103_v56 = vmul.f32 %v61_v29, %v1215_v52  ;;  %v183_v57 = vmax.f32 %v151_v47, 0.0  ;;  %v105_v58 = vmul.f32 %v69_v30, %v1215_v52  ;;  %v185_v60 = vmax.f32 %v153_v48, 0.0 }
  0x88   :  { %v102_v61 = vmul.f32 %v57_v31, %v1215_v52  ;;  %v182_v62 = vmax.f32 %v150_v49, 0.0  ;;  %v104_v63 = vmul.f32 %v65_v32, %v1215_v52  ;;  %v184_v3 = vmax.f32 %v152_v50, 0.0 }
  0x89   :  { %v159_v0 = vadd.f32 %v1213_v51, %v103_v56  ;;  %v161_v1 = vadd.f32 %v1213_v51, %v105_v58  ;;  %v107_v4 = vmul.f32 %v1201_v33, %v1215_v52  ;;  %v1233_v5 = vpop.permute.xlu1 %50  ;;  %v187_v9 = vmax.f32 %v1217_v53, 0.0 }
  0x8a   :  { %v1235_v6 = vpop.permute.xlu0 %45  ;;  %v158_v7 = vadd.f32 %v1213_v51, %v102_v61  ;;  %v160_v8 = vadd.f32 %v1213_v51, %v104_v63  ;;  %v109_v10 = vmul.f32 %v1203_v34, %v1215_v52  ;;  %v119_v14 = vmul.f32 %v61_v29, %v1233_v5 }
  0x8b   :  { %v191_v11 = vmax.f32 %v159_v0, 0.0  ;;  %v193_v12 = vmax.f32 %v161_v1, 0.0  ;;  %v111_v13 = vmul.f32 %v61_v29, %v1235_v6  ;;  %v113_v17 = vmul.f32 %v69_v30, %v1235_v6  ;;  %v1073_v1 = vld [vmem:[%s1451_s3] sm:$0xff]  }
  0x8c   :  { %v190_v15 = vmax.f32 %v158_v7, 0.0  ;;  %v192_v16 = vmax.f32 %v160_v8, 0.0  ;;  %v121_v18 = vmul.f32 %v69_v30, %v1233_v5  ;;  %v110_v21 = vmul.f32 %v57_v31, %v1235_v6 }
  0x8d   :  { %v219_v19 = vpack.c.bf16 %v191_v11, %v183_v57  ;;  %v221_v20 = vpack.c.bf16 %v193_v12, %v185_v60  ;;  %v118_v22 = vmul.f32 %v57_v31, %v1233_v5  ;;  %v1248_v23 = vpop.permute.xlu1 %147  ;;  %v112_v27 = vmul.f32 %v65_v32, %v1235_v6 }
  0x8e   :  { %v1250_v24 = vpop.permute.xlu0 %142  ;;  %v218_v25 = vpack.c.bf16 %v190_v15, %v182_v62  ;;  %v220_v26 = vpack.c.bf16 %v192_v16, %v184_v3  ;;  %v120_v28 = vmul.f32 %v65_v32, %v1233_v5  ;;  %v175_v30 = vadd.f32 %v1248_v23, %v119_v14 }
  0x8f   :  { %275 = vmatprep.subr.bf16.mxu0 %v219_v19  ;;  %328 = vmatprep.subr.bf16.mxu1 %v221_v20  ;;  %v167_v29 = vadd.f32 %v1250_v24, %v111_v13  ;;  %v169_v37 = vadd.f32 %v1250_v24, %v113_v17  ;;  %v189_v31 = vmax.f32 %v1219_v54, 0.0  ;;  %v177_v38 = vadd.f32 %v1248_v23, %v121_v18 }
  0x90   :  { %276 = vmatpush1.bf16.msra.mxu0 %v218_v25  ;;  %329 = vmatpush1.bf16.msra.mxu1 %v220_v26  ;;  %v166_v39 = vadd.f32 %v1250_v24, %v110_v21  ;;  %v174_v40 = vadd.f32 %v1248_v23, %v118_v22  ;;  %v186_v32 = vmax.f32 %v1221_v55, 0.0  ;;  %v207_v42 = vmax.f32 %v175_v30, 0.0 }
  0x91   :  { %v199_v41 = vmax.f32 %v167_v29, 0.0  ;;  %v201_v43 = vmax.f32 %v169_v37, 0.0  ;;  %v168_v44 = vadd.f32 %v1250_v24, %v112_v27  ;;  %v209_v45 = vmax.f32 %v177_v38, 0.0 }
  0x92   :  { %v198_v46 = vmax.f32 %v166_v39, 0.0  ;;  %v206_v47 = vmax.f32 %v174_v40, 0.0  ;;  %v176_v48 = vadd.f32 %v1248_v23, %v120_v28  ;;  %v163_v53 = vadd.f32 %v1213_v51, %v107_v4 }
  0x93   :  { %v227_v49 = vpack.c.bf16 %v207_v42, %v199_v41  ;;  %v200_v50 = vmax.f32 %v168_v44, 0.0  ;;  %v165_v54 = vadd.f32 %v1213_v51, %v109_v10  ;;  %v229_v56 = vpack.c.bf16 %v209_v45, %v201_v43 }
  0x94   :  { %v226_v57 = vpack.c.bf16 %v206_v47, %v198_v46  ;;  %v208_v58 = vmax.f32 %v176_v48, 0.0  ;;  %v106_v55 = vmul.f32 %v1205_v35, %v1215_v52  ;;  %v195_v60 = vmax.f32 %v163_v53, 0.0 }
  0x95   :  { %277 = vmatprep.subr.bf16.mxu0 %v227_v49  ;;  %v197_v61 = vmax.f32 %v165_v54, 0.0  ;;  %v108_v62 = vmul.f32 %v1207_v36, %v1215_v52  ;;  %v115_v63 = vmul.f32 %v1201_v33, %v1235_v6  ;;  %330 = vmatprep.subr.bf16.mxu1 %v229_v56  ;;  %v188_v4 = vmax.f32 %v1225_v59, 0.0 }
  0x96   :  { %278 = vmatpush1.bf16.msra.mxu0 %v226_v57  ;;  %v228_v0 = vpack.c.bf16 %v208_v58, %v200_v50  ;;  %v162_v3 = vadd.f32 %v1213_v51, %v106_v55  ;;  %v123_v7 = vmul.f32 %v1201_v33, %v1233_v5  ;;  %v223_v8 = vpack.c.bf16 %v195_v60, %v187_v9 }
  0x97   :  { %v225_v10 = vpack.c.bf16 %v197_v61, %v189_v31  ;;  %v164_v52 = vadd.f32 %v1213_v51, %v108_v62  ;;  %v171_v11 = vadd.f32 %v1250_v24, %v115_v63  ;;  %v117_v14 = vmul.f32 %v1203_v34, %v1235_v6  ;;  %v1074_v31 = vld [vmem:[%s1451_s3 + $0x8] sm:$0xff]  }
  0x98   :  { %331 = vmatpush1.bf16.msra.mxu1 %v228_v0  ;;  %v194_v12 = vmax.f32 %v162_v3, 0.0  ;;  %v179_v13 = vadd.f32 %v1248_v23, %v123_v7  ;;  %v125_v15 = vmul.f32 %v1203_v34, %v1233_v5  ;;  %381 = vmatprep.subr.bf16.mxu0 %v223_v8  ;;  %v114_v9 = vmul.f32 %v1205_v35, %v1235_v6 }
  0x99   :  { %434 = vmatprep.subr.bf16.mxu1 %v225_v10  ;;  %v196_v59 = vmax.f32 %v164_v52, 0.0  ;;  %v203_v33 = vmax.f32 %v171_v11, 0.0  ;;  %v122_v51 = vmul.f32 %v1205_v35, %v1233_v5  ;;  %1039 = vmatmul.mubr.msk.bf16.vlgmr.msra.gmra.mrb[0].mxu0 %vm268_vm0, %v1073_v1  ;;  %v173_v18 = vadd.f32 %v1250_v24, %v117_v14 }
  0x9a   :  { %v222_v16 = vpack.c.bf16 %v194_v12, %v186_v32  ;;  %v211_v17 = vmax.f32 %v179_v13, 0.0  ;;  %v181_v19 = vadd.f32 %v1248_v23, %v125_v15  ;;  %v170_v20 = vadd.f32 %v1250_v24, %v114_v9  ;;  %317 = vmatprep.mubr.bf16.mxu0 %v1101_v2 }
  0x9b   :  { %1041 = vmatmul.mubr.msk.bf16.vlgmr.msra.gmra.mrb[0].mxu1 %vm268_vm0, %v1073_v1  ;;  %v224_v34 = vpack.c.bf16 %v196_v59, %v188_v4  ;;  %v178_v21 = vadd.f32 %v1248_v23, %v122_v51  ;;  %v116_v22 = vmul.f32 %v1207_v36, %v1235_v6  ;;  %v205_v25 = vmax.f32 %v173_v18, 0.0 }
  0x9c   :  { %382 = vmatpush1.bf16.msra.mxu0 %v222_v16  ;;  %v231_v35 = vpack.c.bf16 %v211_v17, %v203_v33  ;;  %v213_v26 = vmax.f32 %v181_v19, 0.0  ;;  %v124_v27 = vmul.f32 %v1207_v36, %v1233_v5  ;;  %v202_v28 = vmax.f32 %v170_v20, 0.0  ;;  %370 = vmatprep.mubr.bf16.mxu1 %v1101_v2 }
  0x9d   :  { %435 = vmatpush1.bf16.msra.mxu1 %v224_v34  ;;  %v210_v29 = vmax.f32 %v178_v21, 0.0  ;;  %v172_v30 = vadd.f32 %v1250_v24, %v116_v22  ;;  %v1321_v24 = vpop.permute.xlu0 %240 }
  0x9e   :  { %383 = vmatprep.subr.bf16.mxu0 %v231_v35  ;;  %v233_v37 = vpack.c.bf16 %v213_v26, %v205_v25  ;;  %v180_v6 = vadd.f32 %v1248_v23, %v124_v27  ;;  %v1319_v23 = vpop.permute.xlu1 %245 }
  0x9f   :  { %v230_v38 = vpack.c.bf16 %v210_v29, %v202_v28  ;;  %v204_v39 = vmax.f32 %v172_v30, 0.0 }
  0xa0   :  { %436 = vmatprep.subr.bf16.mxu1 %v233_v37  ;;  %v212_v36 = vmax.f32 %v180_v6, 0.0 }
  0xa1   :  { %384 = vmatpush1.bf16.msra.mxu0 %v230_v38  ;;  %v1333_v7 = vpop.permute.xlu0 %250 }
  0xa2   :  { %v232_v5 = vpack.c.bf16 %v212_v36, %v204_v39  ;;  %1040 = vmatmul.mubr.msk.bf16.gmra.mrb[4].mxu0 %vm268_vm0, %v1074_v31  ;;  %v1331_v0 = vpop.permute.xlu1 %255 }
  0xa3   :  { %1042 = vmatmul.mubr.msk.bf16.gmra.mrb[4].mxu1 %vm268_vm0, %v1074_v31  ;;  %413 = vmatprep.mubr.bf16.mxu0 %v1101_v2 }
  0xa4   :  { %437 = vmatpush1.bf16.msra.mxu1 %v232_v5  ;;  %466 = vmatprep.mubr.bf16.mxu1 %v1101_v2 }
  0xaa   :  { %1043 = vmatmul.mubr.msk.bf16.vlgmr.msra.gmra.mrb[8].mxu0 %vm268_vm0, %v1073_v1 }
  0xab   :  { %1045 = vmatmul.mubr.msk.bf16.vlgmr.msra.gmra.mrb[8].mxu1 %vm268_vm0, %v1073_v1  ;;  %423 = vmatprep.mubr.bf16.mxu0 %v1101_v2 }
  0xac   :  { %476 = vmatprep.mubr.bf16.mxu1 %v1101_v2 }
  0xb2   :  { %1044 = vmatmul.mubr.msk.bf16.gmra.mrb[12].mxu0 %vm268_vm0, %v1074_v31 }
  0xb3   :  { %1046 = vmatmul.mubr.msk.bf16.gmra.mrb[12].mxu1 %vm268_vm0, %v1074_v31  ;;  %613 = vmatprep.mubr.bf16.mxu0 %v1101_v2 }
  0xb4   :  { %666 = vmatprep.mubr.bf16.mxu1 %v1101_v2 }
 0x16c   :  { %v309_v40 = vpop.f32.mrb[0].mxu0 }
 0x16d   :  { %v310_v32 = vadd.f32 %v309_v40, %v1321_v24  ;;  %v311_v42 = vpop.f32.mrb[1].mxu0 }
 0x16e   :  { %v362_v41 = vpop.f32.mrb[0].mxu1  ;;  %v312_v44 = vadd.f32 %v311_v42, %v1321_v24  ;;  %v313_v46 = vpop.f32.mrb[2].mxu0 }
 0x16f   :  { %v363_v43 = vadd.f32 %v362_v41, %v1321_v24  ;;  %v364_v45 = vpop.f32.mrb[1].mxu1  ;;  %v314_v48 = vadd.f32 %v313_v46, %v1319_v23  ;;  %v315_v50 = vpop.f32.mrb[3].mxu0  ;;  %v487_v57 = vmax.f32 %v310_v32, 0.0 }
 0x170   :  { %v365_v47 = vadd.f32 %v364_v45, %v1321_v24  ;;  %v366_v49 = vpop.f32.mrb[2].mxu1  ;;  %v316_v54 = vadd.f32 %v315_v50, %v1319_v23  ;;  %v488_v61 = vmax.f32 %v312_v44, 0.0  ;;  %v1349_v44 = vld [vmem:[%s1451_s3 + $0x10] sm:$0xff]  }
 0x171   :  { %v367_v53 = vadd.f32 %v366_v49, %v1319_v23  ;;  %v368_v56 = vpop.f32.mrb[3].mxu1  ;;  %v495_v58 = vmax.f32 %v314_v48, 0.0  ;;  %v489_v60 = vmax.f32 %v363_v43, 0.0 }
 0x172   :  { %v369_v55 = vadd.f32 %v368_v56, %v1319_v23  ;;  %v496_v63 = vmax.f32 %v316_v54, 0.0  ;;  %v490_v1 = vmax.f32 %v365_v47, 0.0 }
 0x173   :  { %v497_v62 = vmax.f32 %v367_v53, 0.0  ;;  %v524_v3 = vpack.c.bf16 %v495_v58, %v487_v57 }
 0x174   :  { %v498_v4 = vmax.f32 %v369_v55, 0.0  ;;  %v525_v10 = vpack.c.bf16 %v496_v63, %v488_v61 }
 0x175   :  { %v526_v8 = vpack.c.bf16 %v497_v62, %v489_v60  ;;  %v319_v52 = vpop.f32.mrb[4].mxu0 }
 0x176   :  { %v527_v11 = vpack.c.bf16 %v498_v4, %v490_v1  ;;  %v320_v12 = vadd.f32 %v319_v52, %v1333_v7  ;;  %v372_v13 = vpop.f32.mrb[4].mxu1  ;;  %v321_v14 = vpop.f32.mrb[5].mxu0  ;;  %581 = vmatprep.subr.bf16.mxu0 %v525_v10 }
 0x177   :  { %v373_v15 = vadd.f32 %v372_v13, %v1333_v7  ;;  %v322_v59 = vadd.f32 %v321_v14, %v1333_v7  ;;  %v374_v33 = vpop.f32.mrb[5].mxu1  ;;  %v323_v9 = vpop.f32.mrb[6].mxu0  ;;  %582 = vmatpush1.bf16.msra.mxu0 %v524_v3 }
 0x178   :  { %v375_v51 = vadd.f32 %v374_v33, %v1333_v7  ;;  %v324_v16 = vadd.f32 %v323_v9, %v1331_v0  ;;  %v376_v17 = vpop.f32.mrb[6].mxu1  ;;  %634 = vmatprep.subr.bf16.mxu1 %v527_v11  ;;  %v325_v18 = vpop.f32.mrb[7].mxu0  ;;  %v503_v21 = vmax.f32 %v320_v12, 0.0 }
 0x179   :  { %v377_v19 = vadd.f32 %v376_v17, %v1331_v0  ;;  %v326_v34 = vadd.f32 %v325_v18, %v1331_v0  ;;  %v378_v20 = vpop.f32.mrb[7].mxu1  ;;  %635 = vmatpush1.bf16.msra.mxu1 %v526_v8  ;;  %v505_v25 = vmax.f32 %v373_v15, 0.0  ;;  %v504_v26 = vmax.f32 %v322_v59, 0.0  ;;  %v1076_v15 = vld [vmem:[%s1451_s3 + $0x18] sm:$0xff]  }
 0x17a   :  { %v511_v22 = vmax.f32 %v324_v16, 0.0  ;;  %v379_v35 = vadd.f32 %v378_v20, %v1331_v0  ;;  %v506_v29 = vmax.f32 %v375_v51, 0.0 }
 0x17b   :  { %v513_v27 = vmax.f32 %v377_v19, 0.0  ;;  %v512_v28 = vmax.f32 %v326_v34, 0.0 }
 0x17c   :  { %v532_v30 = vpack.c.bf16 %v511_v22, %v503_v21  ;;  %v514_v37 = vmax.f32 %v379_v35, 0.0 }
 0x17d   :  { %v534_v6 = vpack.c.bf16 %v513_v27, %v505_v25  ;;  %v533_v31 = vpack.c.bf16 %v512_v28, %v504_v26  ;;  %v415_v38 = vpop.f32.mrb[8].mxu0 }
 0x17e   :  { %v535_v39 = vpack.c.bf16 %v514_v37, %v506_v29  ;;  %v416_v36 = vadd.f32 %v415_v38, %v1321_v24  ;;  %v468_v5 = vpop.f32.mrb[8].mxu1  ;;  %v417_v40 = vpop.f32.mrb[9].mxu0 }
 0x17f   :  { %v469_v32 = vadd.f32 %v468_v5, %v1321_v24  ;;  %v418_v41 = vadd.f32 %v417_v40, %v1321_v24  ;;  %v470_v42 = vpop.f32.mrb[9].mxu1  ;;  %v419_v43 = vpop.f32.mrb[10].mxu0  ;;  %583 = vmatprep.subr.bf16.mxu0 %v533_v31 }
 0x180   :  { %v471_v45 = vadd.f32 %v470_v42, %v1321_v24  ;;  %v420_v46 = vadd.f32 %v419_v43, %v1319_v23  ;;  %v472_v47 = vpop.f32.mrb[10].mxu1  ;;  %636 = vmatprep.subr.bf16.mxu1 %v535_v39  ;;  %v421_v48 = vpop.f32.mrb[11].mxu0  ;;  %584 = vmatpush1.bf16.msra.mxu0 %v532_v30  ;;  %v491_v54 = vmax.f32 %v416_v36, 0.0 }
 0x181   :  { %v473_v49 = vadd.f32 %v472_v47, %v1319_v23  ;;  %v422_v50 = vadd.f32 %v421_v48, %v1319_v23  ;;  %v474_v53 = vpop.f32.mrb[11].mxu1  ;;  %637 = vmatpush1.bf16.msra.mxu1 %v534_v6  ;;  %v493_v58 = vmax.f32 %v469_v32, 0.0  ;;  %v492_v55 = vmax.f32 %v418_v41, 0.0  ;;  %v1389_v37 = vpop.permute.xlu0 %547 }
 0x182   :  { %v499_v56 = vmax.f32 %v420_v46, 0.0  ;;  %v475_v57 = vadd.f32 %v474_v53, %v1319_v23  ;;  %v494_v61 = vmax.f32 %v471_v45, 0.0 }
 0x183   :  { %v501_v60 = vmax.f32 %v473_v49, 0.0  ;;  %v500_v24 = vmax.f32 %v422_v50, 0.0  ;;  %1057 = vmatmul.mubr.msk.bf16.vlgmr.msra.gmra.mrb[16].mxu0 %vm268_vm0, %v1349_v44 }
 0x184   :  { %v528_v62 = vpack.c.bf16 %v499_v56, %v491_v54  ;;  %v502_v63 = vmax.f32 %v475_v57, 0.0  ;;  %1059 = vmatmul.mubr.msk.bf16.vlgmr.msra.gmra.mrb[16].mxu1 %vm268_vm0, %v1349_v44  ;;  %623 = vmatprep.mubr.bf16.mxu0 %v1101_v2 }
 0x185   :  { %v530_v1 = vpack.c.bf16 %v501_v60, %v493_v58  ;;  %v529_v3 = vpack.c.bf16 %v500_v24, %v492_v55  ;;  %v425_v4 = vpop.f32.mrb[12].mxu0  ;;  %676 = vmatprep.mubr.bf16.mxu1 %v1101_v2 }
 0x186   :  { %v531_v23 = vpack.c.bf16 %v502_v63, %v494_v61  ;;  %v426_v8 = vadd.f32 %v425_v4, %v1333_v7  ;;  %v478_v10 = vpop.f32.mrb[12].mxu1  ;;  %v427_v52 = vpop.f32.mrb[13].mxu0 }
 0x187   :  { %v479_v11 = vadd.f32 %v478_v10, %v1333_v7  ;;  %v428_v12 = vadd.f32 %v427_v52, %v1333_v7  ;;  %v480_v13 = vpop.f32.mrb[13].mxu1  ;;  %v429_v14 = vpop.f32.mrb[14].mxu0  ;;  %687 = vmatprep.subr.bf16.mxu0 %v529_v3 }
 0x188   :  { %v481_v59 = vadd.f32 %v480_v13, %v1333_v7  ;;  %v430_v33 = vadd.f32 %v429_v14, %v1331_v0  ;;  %v482_v9 = vpop.f32.mrb[14].mxu1  ;;  %740 = vmatprep.subr.bf16.mxu1 %v531_v23  ;;  %v431_v51 = vpop.f32.mrb[15].mxu0  ;;  %688 = vmatpush1.bf16.msra.mxu0 %v528_v62  ;;  %v507_v19 = vmax.f32 %v426_v8, 0.0 }
 0x189   :  { %v483_v16 = vadd.f32 %v482_v9, %v1331_v0  ;;  %v432_v17 = vadd.f32 %v431_v51, %v1331_v0  ;;  %v484_v18 = vpop.f32.mrb[15].mxu1  ;;  %741 = vmatpush1.bf16.msra.mxu1 %v530_v1  ;;  %v509_v21 = vmax.f32 %v479_v11, 0.0  ;;  %v508_v22 = vmax.f32 %v428_v12, 0.0  ;;  %v1401_v61 = vpop.permute.xlu0 %557 }
 0x18a   :  { %v515_v34 = vmax.f32 %v430_v33, 0.0  ;;  %v485_v20 = vadd.f32 %v484_v18, %v1331_v0  ;;  %v510_v25 = vmax.f32 %v481_v59, 0.0  ;;  %v1387_v0 = vpop.permute.xlu1 %552 }
 0x18b   :  { %v517_v35 = vmax.f32 %v483_v16, 0.0  ;;  %v516_v7 = vmax.f32 %v432_v17, 0.0  ;;  %1058 = vmatmul.mubr.msk.bf16.gmra.mrb[20].mxu0 %vm268_vm0, %v1076_v15 }
 0x18c   :  { %v536_v26 = vpack.c.bf16 %v515_v34, %v507_v19  ;;  %v518_v27 = vmax.f32 %v485_v20, 0.0  ;;  %1060 = vmatmul.mubr.msk.bf16.gmra.mrb[20].mxu1 %vm268_vm0, %v1076_v15  ;;  %719 = vmatprep.mubr.bf16.mxu0 %v1101_v2 }
 0x18d   :  { %v538_v28 = vpack.c.bf16 %v517_v35, %v509_v21  ;;  %v537_v29 = vpack.c.bf16 %v516_v7, %v508_v22  ;;  %772 = vmatprep.mubr.bf16.mxu1 %v1101_v2 }
 0x18e   :  { %v539_v30 = vpack.c.bf16 %v518_v27, %v510_v25  ;;  %v1399_v58 = vpop.permute.xlu1 %562 }
 0x18f   :  { %689 = vmatprep.subr.bf16.mxu0 %v537_v29 }
 0x190   :  { %742 = vmatprep.subr.bf16.mxu1 %v539_v30  ;;  %690 = vmatpush1.bf16.msra.mxu0 %v536_v26 }
 0x191   :  { %743 = vmatpush1.bf16.msra.mxu1 %v538_v28 }
 0x193   :  { %1061 = vmatmul.mubr.msk.bf16.vlgmr.msra.gmra.mrb[24].mxu0 %vm268_vm0, %v1349_v44 }
 0x194   :  { %1063 = vmatmul.mubr.msk.bf16.vlgmr.msra.gmra.mrb[24].mxu1 %vm268_vm0, %v1349_v44  ;;  %729 = vmatprep.mubr.bf16.mxu0 %v1101_v2 }
 0x195   :  { %782 = vmatprep.mubr.bf16.mxu1 %v1101_v2 }
 0x19b   :  { %1062 = vmatmul.mubr.msk.bf16.gmra.mrb[28].mxu0 %vm268_vm0, %v1076_v15 }
 0x19c   :  { %1064 = vmatmul.mubr.msk.bf16.gmra.mrb[28].mxu1 %vm268_vm0, %v1076_v15  ;;  %883 = vmatprep.mubr.bf16.mxu0 %v1101_v2 }
 0x19d   :  { %924 = vmatprep.mubr.bf16.mxu1 %v1101_v2 }
 0x256   :  { %v615_v6 = vpop.f32.mrb[16].mxu0 }
 0x257   :  { %v616_v31 = vadd.f32 %v615_v6, %v1389_v37  ;;  %v668_v38 = vpop.f32.mrb[16].mxu1  ;;  %v617_v39 = vpop.f32.mrb[17].mxu0 }
 0x258   :  { %v669_v36 = vadd.f32 %v668_v38, %v1389_v37  ;;  %v618_v5 = vadd.f32 %v617_v39, %v1389_v37  ;;  %v670_v40 = vpop.f32.mrb[17].mxu1  ;;  %v619_v32 = vpop.f32.mrb[18].mxu0 }
 0x259   :  { %v671_v41 = vadd.f32 %v670_v40, %v1389_v37  ;;  %v620_v42 = vadd.f32 %v619_v32, %v1387_v0  ;;  %v672_v43 = vpop.f32.mrb[18].mxu1  ;;  %v621_v44 = vpop.f32.mrb[19].mxu0  ;;  %v793_v48 = vmax.f32 %v616_v31, 0.0 }
 0x25a   :  { %v673_v45 = vadd.f32 %v672_v43, %v1387_v0  ;;  %v622_v46 = vadd.f32 %v621_v44, %v1387_v0  ;;  %v674_v47 = vpop.f32.mrb[19].mxu1  ;;  %v795_v53 = vmax.f32 %v669_v36, 0.0  ;;  %v794_v54 = vmax.f32 %v618_v5, 0.0 }
 0x25b   :  { %v801_v49 = vmax.f32 %v620_v42, 0.0  ;;  %v675_v50 = vadd.f32 %v674_v47, %v1387_v0  ;;  %v796_v55 = vmax.f32 %v671_v41, 0.0  ;;  %v825_v42 = vld [vmem:[%s1453_s5] sm:$0xf]  ;;  %s1102_s5 = smov [#allocation2]  }
 0x25c   :  { %v803_v56 = vmax.f32 %v673_v45, 0.0  ;;  %v802_v57 = vmax.f32 %v622_v46, 0.0  ;;  %s1029_s18 = sshll.u32 %s1102_s5, 4  ;;  %s1030_s18 = int_to_ptr.vmem [resolvable:$true] %s1029_s18 }
 0x25d   :  { %v826_v60 = vpack.c.bf16 %v801_v49, %v793_v48  ;;  %v804_v24 = vmax.f32 %v675_v50, 0.0  ;;  %s1077_s1 = scalar_lea.vmem %s1030_s18, 1024  ;;  %p1082_p1 = scmp.lt.s32.totalorder %s1030_s18, %s1030_s18 }
 0x25e   :  { %v828_v62 = vpack.c.bf16 %v803_v56, %v795_v53  ;;  %v827_v63 = vpack.c.bf16 %v802_v57, %v794_v54  ;;  %v625_v1 = vpop.f32.mrb[20].mxu0  ;;  %p1078_p0 = scmp.ne.s32.totalorder %s1030_s18, %s1077_s1  ;;  %p1083_p2 = scmp.lt.s32.totalorder %s1077_s1, %s1077_s1 }
 0x25f   :  { %v829_v3 = vpack.c.bf16 %v804_v24, %v796_v55  ;;  %v626_v4 = vadd.f32 %v625_v1, %v1401_v61  ;;  %v678_v23 = vpop.f32.mrb[20].mxu1  ;;  %v627_v8 = vpop.f32.mrb[21].mxu0 }
 0x260   :  { %v679_v10 = vadd.f32 %v678_v23, %v1401_v61  ;;  %v628_v52 = vadd.f32 %v627_v8, %v1401_v61  ;;  %v680_v11 = vpop.f32.mrb[21].mxu1  ;;  %v629_v12 = vpop.f32.mrb[22].mxu0  ;;  %851 = vmatprep.subr.bf16.mxu0 %v827_v63  ;;  %p1084_p3 = por %p1083_p2, %p1082_p1 }
 0x261   :  { %v681_v13 = vadd.f32 %v680_v11, %v1401_v61  ;;  %v630_v14 = vadd.f32 %v629_v12, %v1399_v58  ;;  %v682_v15 = vpop.f32.mrb[22].mxu1  ;;  %892 = vmatprep.subr.bf16.mxu1 %v829_v3  ;;  %v631_v59 = vpop.f32.mrb[23].mxu0  ;;  %852 = vmatpush1.bf16.msra.mxu0 %v826_v60  ;;  %v809_v16 = vmax.f32 %v626_v4, 0.0 }
 0x262   :  { %v683_v33 = vadd.f32 %v682_v15, %v1399_v58  ;;  %v632_v9 = vadd.f32 %v631_v59, %v1399_v58  ;;  %v684_v51 = vpop.f32.mrb[23].mxu1  ;;  %893 = vmatpush1.bf16.msra.mxu1 %v828_v62  ;;  %v811_v19 = vmax.f32 %v679_v10, 0.0  ;;  %v810_v34 = vmax.f32 %v628_v52, 0.0  ;;  %p1085_p4 = pnand %p1084_p3, %p1078_p0 }
 0x263   :  { %v817_v17 = vmax.f32 %v630_v14, 0.0  ;;  %v685_v18 = vadd.f32 %v684_v51, %v1399_v58  ;;  %v812_v22 = vmax.f32 %v681_v13, 0.0 }
 0x264   :  { %v819_v20 = vmax.f32 %v683_v33, 0.0  ;;  %v818_v21 = vmax.f32 %v632_v9, 0.0 }
 0x265   :  { %v834_v35 = vpack.c.bf16 %v817_v17, %v809_v16  ;;  %v820_v7 = vmax.f32 %v685_v18, 0.0 }
 0x266   :  { %v836_v25 = vpack.c.bf16 %v819_v20, %v811_v19  ;;  %v835_v26 = vpack.c.bf16 %v818_v21, %v810_v34  ;;  %v721_v27 = vpop.f32.mrb[24].mxu0 }
 0x267   :  { %v837_v28 = vpack.c.bf16 %v820_v7, %v812_v22  ;;  %v722_v29 = vadd.f32 %v721_v27, %v1389_v37  ;;  %v774_v30 = vpop.f32.mrb[24].mxu1  ;;  %v723_v6 = vpop.f32.mrb[25].mxu0 }
 0x268   :  { %v775_v31 = vadd.f32 %v774_v30, %v1389_v37  ;;  %v724_v38 = vadd.f32 %v723_v6, %v1389_v37  ;;  %v776_v39 = vpop.f32.mrb[25].mxu1  ;;  %v725_v36 = vpop.f32.mrb[26].mxu0  ;;  %853 = vmatprep.subr.bf16.mxu0 %v835_v26 }
 0x269   :  { %v777_v5 = vadd.f32 %v776_v39, %v1389_v37  ;;  %v726_v40 = vadd.f32 %v725_v36, %v1387_v0  ;;  %v778_v32 = vpop.f32.mrb[26].mxu1  ;;  %894 = vmatprep.subr.bf16.mxu1 %v837_v28  ;;  %v727_v41 = vpop.f32.mrb[27].mxu0  ;;  %854 = vmatpush1.bf16.msra.mxu0 %v834_v35  ;;  %v797_v46 = vmax.f32 %v722_v29, 0.0 }
 0x26a   :  { %v779_v43 = vadd.f32 %v778_v32, %v1387_v0  ;;  %v728_v44 = vadd.f32 %v727_v41, %v1387_v0  ;;  %v780_v45 = vpop.f32.mrb[27].mxu1  ;;  %895 = vmatpush1.bf16.msra.mxu1 %v836_v25  ;;  %v799_v48 = vmax.f32 %v775_v31, 0.0  ;;  %v798_v49 = vmax.f32 %v724_v38, 0.0  ;;  %v846_v22 = vpop.permute.xlu0 %845 }
 0x26b   :  { %v805_v47 = vmax.f32 %v726_v40, 0.0  ;;  %v781_v37 = vadd.f32 %v780_v45, %v1387_v0  ;;  %v800_v54 = vmax.f32 %v777_v5, 0.0 }
 0x26c   :  { %v807_v50 = vmax.f32 %v779_v43, 0.0  ;;  %v806_v53 = vmax.f32 %v728_v44, 0.0  ;;  %1065 = vmatmul.mubr.msk.bf16.vlgmr.msra.gmra.mrb[32].mxu0 %vm268_vm0, %v825_v42 }
 0x26d   :  { %v830_v56 = vpack.c.bf16 %v805_v47, %v797_v46  ;;  %v808_v57 = vmax.f32 %v781_v37, 0.0  ;;  %1066 = vmatmul.mubr.msk.bf16.vlgmr.msra.gmra.mrb[32].mxu1 %vm268_vm0, %v825_v42  ;;  %965 = vmatprep.mubr.bf16.mxu0 %v1101_v2 }
 0x26e   :  { %v832_v55 = vpack.c.bf16 %v807_v50, %v799_v48  ;;  %v831_v60 = vpack.c.bf16 %v806_v53, %v798_v49  ;;  %v731_v24 = vpop.f32.mrb[28].mxu0  ;;  %1006 = vmatprep.mubr.bf16.mxu1 %v1101_v2 }
 0x26f   :  { %v833_v62 = vpack.c.bf16 %v808_v57, %v800_v54  ;;  %v732_v0 = vadd.f32 %v731_v24, %v1401_v61  ;;  %v784_v63 = vpop.f32.mrb[28].mxu1  ;;  %v733_v1 = vpop.f32.mrb[29].mxu0 }
 0x270   :  { %v785_v3 = vadd.f32 %v784_v63, %v1401_v61  ;;  %v734_v4 = vadd.f32 %v733_v1, %v1401_v61  ;;  %v786_v23 = vpop.f32.mrb[29].mxu1  ;;  %v735_v8 = vpop.f32.mrb[30].mxu0  ;;  %933 = vmatprep.subr.bf16.mxu0 %v831_v60 }
 0x271   :  { %v787_v10 = vadd.f32 %v786_v23, %v1401_v61  ;;  %v736_v52 = vadd.f32 %v735_v8, %v1399_v58  ;;  %v788_v11 = vpop.f32.mrb[30].mxu1  ;;  %974 = vmatprep.subr.bf16.mxu1 %v833_v62  ;;  %v737_v12 = vpop.f32.mrb[31].mxu0  ;;  %934 = vmatpush1.bf16.msra.mxu0 %v830_v56  ;;  %v813_v15 = vmax.f32 %v732_v0, 0.0 }
 0x272   :  { %v789_v2 = vadd.f32 %v788_v11, %v1399_v58  ;;  %v738_v13 = vadd.f32 %v737_v12, %v1399_v58  ;;  %v790_v14 = vpop.f32.mrb[31].mxu1  ;;  %975 = vmatpush1.bf16.msra.mxu1 %v832_v55  ;;  %v815_v9 = vmax.f32 %v785_v3, 0.0  ;;  %v814_v51 = vmax.f32 %v734_v4, 0.0 }
 0x273   :  { %v821_v59 = vmax.f32 %v736_v52, 0.0  ;;  %v791_v33 = vadd.f32 %v790_v14, %v1399_v58  ;;  %v816_v17 = vmax.f32 %v787_v10, 0.0 }
 0x274   :  { %v823_v16 = vmax.f32 %v789_v2, 0.0  ;;  %v822_v61 = vmax.f32 %v738_v13, 0.0 }
 0x275   :  { %v838_v18 = vpack.c.bf16 %v821_v59, %v813_v15  ;;  %v824_v19 = vmax.f32 %v791_v33, 0.0 }
 0x276   :  { %v840_v34 = vpack.c.bf16 %v823_v16, %v815_v9  ;;  %v839_v20 = vpack.c.bf16 %v822_v61, %v814_v51 }
 0x277   :  { %v841_v21 = vpack.c.bf16 %v824_v19, %v816_v17 }
 0x278   :  { %935 = vmatprep.subr.bf16.mxu0 %v839_v20 }
 0x279   :  { %976 = vmatprep.subr.bf16.mxu1 %v841_v21  ;;  %936 = vmatpush1.bf16.msra.mxu0 %v838_v18 }
 0x27a   :  { %977 = vmatpush1.bf16.msra.mxu1 %v840_v34 }
 0x27c   :  { %1067 = vmatmul.mubr.msk.bf16.vlgmr.msra.gmra.mrb[36].mxu0 %vm268_vm0, %v825_v42 }
 0x27d   :  { %1068 = vmatmul.mubr.msk.bf16.vlgmr.msra.gmra.mrb[36].mxu1 %vm268_vm0, %v825_v42 }
 0x33f   :  { %v885_v58 = vpop.f32.mrb[32].mxu0 }
 0x340   :  { %v886_v35 = vadd.f32 %v885_v58, %v846_v22  ;;  %v926_v7 = vpop.f32.mrb[32].mxu1  ;;  %v887_v25 = vpop.f32.mrb[33].mxu0 }
 0x341   :  { %v927_v26 = vadd.f32 %v926_v7, %v846_v22  ;;  %v888_v27 = vadd.f32 %v887_v25, %v846_v22  ;;  %v928_v28 = vpop.f32.mrb[33].mxu1  ;;  %v889_v29 = vpop.f32.mrb[34].mxu0 }
 0x342   :  { %1015 = vst [vmem:[#allocation2] sm:$0xff] %v886_v35  ;;  %v929_v30 = vadd.f32 %v928_v28, %v846_v22  ;;  %v930_v6 = vpop.f32.mrb[34].mxu1  ;;  %v890_v31 = vpop.f32.mrb[35].mxu0 }
 0x343   :  { %1017 = vst [vmem:[#allocation2 + $0x10] sm:$0xff] %v927_v26  ;;  %1016 = vst [vmem:[#allocation2 + $0x8] sm:$0xff] %v888_v27  ;;  %v931_v38 = vpop.f32.mrb[35].mxu1 }
 0x344   :  { %1018 = vst [vmem:[#allocation2 + $0x18] sm:$0xff] %v929_v30 }
 0x34f   :  { %v967_v39 = vpop.f32.mrb[36].mxu0 }
 0x350   :  { %v968_v36 = vadd.f32 %v967_v39, %v846_v22  ;;  %v1008_v5 = vpop.f32.mrb[36].mxu1  ;;  %v969_v40 = vpop.f32.mrb[37].mxu0 }
 0x351   :  { %v1009_v32 = vadd.f32 %v1008_v5, %v846_v22  ;;  %v970_v41 = vadd.f32 %v969_v40, %v846_v22  ;;  %v1010_v42 = vpop.f32.mrb[37].mxu1  ;;  %v971_v43 = vpop.f32.mrb[38].mxu0 }
 0x352   :  { %1019 = vst [vmem:[#allocation2 + $0x20] sm:$0xff] %v968_v36  ;;  %v1011_v44 = vadd.f32 %v1010_v42, %v846_v22  ;;  %v1012_v45 = vpop.f32.mrb[38].mxu1  ;;  %v972_v46 = vpop.f32.mrb[39].mxu0 }
 0x353   :  { %1021 = vst [vmem:[#allocation2 + $0x30] sm:$0xff] %v1009_v32  ;;  %1020 = vst [vmem:[#allocation2 + $0x28] sm:$0xff] %v970_v41  ;;  %v1013_v47 = vpop.f32.mrb[39].mxu1 }
 0x354   :  { %1022 = vst [vmem:[#allocation2 + $0x38] sm:$0xff] %v1011_v44 }
 0x355   :  { %1088 = shalt.err (!%p1085_p4)
}
 0x356   :  { %s1089_s21 = scalar_lea.hbm %s1455_s7, 1024 }
 0x357   :  { %p1090_p5 = scmp.ne.s32.totalorder %s1455_s7, %s1089_s21  ;;  %p1093_p6 = scmp.lt.u32.totalorder %s1089_s21, %s1455_s7 }
 0x359   :  { %p1095_p7 = pnand %p1093_p6, %p1090_p5 }
 0x35b   :  { %1098 = shalt.err (!%p1095_p7)
}
 0x35c   :  { %1032 = dma.vmem_to_hbm [thread:$0]  %s1030_s18, 1024, %s1455_s7, [#allocation3]  }
 0x35d   :  { %1099 = dma.done.wait [#allocation3], 1024  }
 0x35e   :  { %1100 = vsyncadd [#allocation3], 4294966272 }
 0x35f   :  { %1036 = vsyncpa [#allocation3], 1 }

</bundles_post_ra>
